<compile_context>
chip_gen: v5e
topology: v5e:2x2
jax: 0.10.0
libtpu: 0.0.40
codegen_flags: <defaults>
</compile_context>

<pallas_src>
import functools

import jax
import jax.numpy as jnp
from jax import lax
from jax.experimental import pallas as pl
from jax.experimental.pallas import tpu as pltpu


# ---------------------------------------------------------------------------
# helpers
# ---------------------------------------------------------------------------
def _round_up(n, m):
    return ((n + m - 1) // m) * m


def _vmem_cap_bytes():
    """Physical per-core VMEM (generation-aware); conservative fallback."""
    try:
        return int(pltpu.get_tpu_info().vmem_capacity_bytes)
    except Exception:
        return 64 << 20  # v7x-sized fallback: safe on every generation


def _vmem_budget():
    # ~80% of physical leaves headroom for compiler-internal scratch and
    # the pipeline's own buffers.
    return int(0.8 * _vmem_cap_bytes())


def _vmem_limit(nbytes):
    need = int(nbytes * 1.25) + (2 << 20)
    return max(16 << 20, min(need, _vmem_budget()))


def _pick_tile(n, cap):
    """Largest multiple of 128 that divides n and is <= cap (n % 128 == 0)."""
    best = 128
    c = 128
    while c <= min(n, cap):
        if n % c == 0:
            best = c
        c += 128
    return best


# ---------------------------------------------------------------------------
# pass 1 kernels: d = rsqrt( colsum(|P^T P|) + 1e-10 )
# ---------------------------------------------------------------------------
def aol_d_resident_kernel(p_ref, d_ref, *, tile_in):
    """P resident; grid walks row-blocks of PTP by slicing the resident copy."""
    r = pl.program_id(0)

    @pl.when(r == 0)
    def _():
        d_ref[...] = jnp.zeros_like(d_ref)

    start = pl.multiple_of(r * tile_in, tile_in)
    p_cols = p_ref[:, pl.ds(start, tile_in)]            # (Out_pad, tile_in)
    # |P[:, r-block]^T @ P| -> (tile_in, In_pad); contracts dim 0 of both
    # operands (MXU-friendly lhs-transposed form).
    blk = jnp.abs(
        lax.dot_general(
            p_cols, p_ref[...],
            dimension_numbers=(((0,), (0,)), ((), ())),
            preferred_element_type=jnp.float32,
        )
    )
    d_ref[...] += jnp.sum(blk, axis=0, keepdims=True)

    @pl.when(r == pl.num_programs(0) - 1)
    def _():
        d_ref[...] = lax.rsqrt(d_ref[...] + 1e-10)


def aol_d_ktiled_kernel(p_rk_ref, p_k_ref, d_ref, ptp_acc):
    """Contraction(Out)-tiled variant for P too large to keep resident.

    abs() is applied only after the FULL Out contraction (pre-abs scratch);
    summing |partial products| would overestimate the column sums.
    """
    r = pl.program_id(0)
    k = pl.program_id(1)
    nk = pl.num_programs(1)

    @pl.when(jnp.logical_and(r == 0, k == 0))
    def _():
        d_ref[...] = jnp.zeros_like(d_ref)

    @pl.when(k == 0)
    def _():
        ptp_acc[...] = jnp.zeros_like(ptp_acc)

    ptp_acc[...] += lax.dot_general(
        p_rk_ref[...], p_k_ref[...],
        dimension_numbers=(((0,), (0,)), ((), ())),
        preferred_element_type=jnp.float32,
    )

    @pl.when(k == nk - 1)
    def _():
        d_ref[...] += jnp.sum(jnp.abs(ptp_acc[...]), axis=0, keepdims=True)

    @pl.when(jnp.logical_and(r == pl.num_programs(0) - 1, k == nk - 1))
    def _():
        d_ref[...] = lax.rsqrt(d_ref[...] + 1e-10)


def _compute_d(P_p, *, In_pad, Out_pad):
    budget = _vmem_budget()
    tile_in = _pick_tile(In_pad, 256)   # cap: bounds the (tile_in, In_pad) blk

    resident_bytes = 4 * (Out_pad * In_pad          # P, single-buffered
                          + tile_in * In_pad        # |PTP| block intermediate
                          + 4 * In_pad)             # d accumulator / buffers
    if resident_bytes <= int(0.7 * budget):
        return pl.pallas_call(
            functools.partial(aol_d_resident_kernel, tile_in=tile_in),
            out_shape=jax.ShapeDtypeStruct((1, In_pad), jnp.float32),
            grid=(In_pad // tile_in,),
            in_specs=[
                # P is resident for the whole reduction: fetched from HBM once
                # and single-buffered (no point double-buffering a constant
                # block -- halves the dominant VMEM term).
                pl.BlockSpec((Out_pad, In_pad), lambda r: (0, 0),
                             pipeline_mode=pl.Buffered(1)),
            ],
            out_specs=pl.BlockSpec((1, In_pad), lambda r: (0, 0)),
            compiler_params=pltpu.CompilerParams(
                dimension_semantics=("arbitrary",),      # reduction axis
                vmem_limit_bytes=_vmem_limit(resident_bytes),
            ),
        )(P_p)

    # P too large to keep resident: tile the Out (contraction) axis as well.
    tile_k = _pick_tile(Out_pad, 256)
    ktiled_bytes = 4 * (2 * tile_k * tile_in        # P[k, r] blocks (dbl buf)
                        + 2 * tile_k * In_pad       # P[k, :] blocks (dbl buf)
                        + tile_in * In_pad          # pre-abs PTP accumulator
                        + 4 * In_pad)
    return pl.pallas_call(
        aol_d_ktiled_kernel,
        out_shape=jax.ShapeDtypeStruct((1, In_pad), jnp.float32),
        grid=(In_pad // tile_in, Out_pad // tile_k),     # reduction axis last
        in_specs=[
            pl.BlockSpec((tile_k, tile_in), lambda r, k: (k, r)),
            pl.BlockSpec((tile_k, In_pad), lambda r, k: (k, 0)),
        ],
        out_specs=pl.BlockSpec((1, In_pad), lambda r, k: (0, 0)),
        scratch_shapes=[pltpu.VMEM((tile_in, In_pad), jnp.float32)],
        compiler_params=pltpu.CompilerParams(
            dimension_semantics=("arbitrary", "arbitrary"),
            vmem_limit_bytes=_vmem_limit(ktiled_bytes),
        ),
    )(P_p, P_p)


# ---------------------------------------------------------------------------
# pass 2 kernel: y = (x * d) @ P^T + bias
# ---------------------------------------------------------------------------
def aol_matmul_kernel(d_ref, x_ref, pt_ref, b_ref, o_ref):
    pt = pt_ref[...]                      # (In_pad, tile_n); bf16 if wrapper cast it
    xd = x_ref[...] * d_ref[...]          # (block_b, In_pad); d stays f32
    if pt.dtype == jnp.bfloat16:
        xd = xd.astype(jnp.bfloat16)      # cast activations only; f32 accumulation
    y = lax.dot_general(
        xd, pt,
        dimension_numbers=(((1,), (0,)), ((), ())),      # canonical (M,K)x(K,N)
        preferred_element_type=jnp.float32,
    )
    o_ref[...] = (y + b_ref[...]).astype(o_ref.dtype)


# ---------------------------------------------------------------------------
# wrapper
# ---------------------------------------------------------------------------
def aol_linear(x, P, bias, *, use_bf16_mxu=False):
    """x: (B, In) f32, P: (Out, In) f32, bias: (Out,) f32 -> (B, Out) f32."""
    B, In = x.shape
    Out, In2 = P.shape
    assert In == In2

    # Lane-dense padding (128 on both In and Out): zero rows/cols of P
    # contribute |0| = 0 to the PTP column sums, padded x columns are zero,
    # padded bias entries are sliced off.  Padded In columns get
    # d = rsqrt(1e-10) ~ 1e5, harmless since the matching x columns are 0;
    # d is never used beyond the first In entries.
    In_pad = _round_up(In, 128)
    Out_pad = _round_up(Out, 128)

    P_p = jnp.zeros((Out_pad, In_pad), P.dtype).at[:Out, :In].set(P)
    b_p = jnp.zeros((1, Out_pad), bias.dtype).at[0, :Out].set(bias)

    # Weight for pass 2: transpose once in the wrapper (layout plumbing); for
    # the bf16 path the cast also happens ONCE here (halves weight DMA and
    # VMEM residency, removes the per-grid-step VPU cast).
    Pt = P_p.astype(jnp.bfloat16).T if use_bf16_mxu else P_p.T   # (In_pad, Out_pad)
    wbytes = 2 if use_bf16_mxu else 4

    # ---- pass 1: column scales d (1, In_pad), f32 --------------------------
    d = _compute_d(P_p, In_pad=In_pad, Out_pad=Out_pad)

    # ---- pass 2: y = (x * d) @ P^T + bias ----------------------------------
    budget = _vmem_budget()
    block_b = min(512, _round_up(B, 8))          # big batch tiles amortize
    tile_n = _pick_tile(Out_pad, 512)            # per-grid-step overhead

    def mm_bytes(bb, tn):
        return (4 * 2 * bb * In_pad              # x tiles (double-buffered)
                + wbytes * 2 * In_pad * tn       # P^T tiles (double-buffered)
                + 4 * 2 * bb * tn                # y tiles (double-buffered)
                + 4 * bb * In_pad                # xd intermediate
                + 4 * 2 * (In_pad + tn))         # d + bias

    # Shrink batch / Out tiles until the working set fits the VMEM budget
    # (bounds P^T residency to In_pad*tile_n -- required on v7x's 64 MiB).
    while mm_bytes(block_b, tile_n) > int(0.7 * budget):
        if block_b > 64:
            block_b = max(8, (block_b // 16) * 8)      # halve, keep mult of 8
        elif tile_n > 128:
            tile_n = _pick_tile(Out_pad, tile_n // 2)
        else:
            break

    B_pad = _round_up(B, block_b)
    x_p = jnp.zeros((B_pad, In_pad), x.dtype).at[:B, :In].set(x)

    y_pad = pl.pallas_call(
        aol_matmul_kernel,
        out_shape=jax.ShapeDtypeStruct((B_pad, Out_pad), x.dtype),
        # Out axis OUTER: each P^T tile is fetched once and reused across all
        # batch tiles; both axes are independent ("parallel") for megacore.
        grid=(Out_pad // tile_n, B_pad // block_b),
        in_specs=[
            pl.BlockSpec((1, In_pad), lambda n, b: (0, 0)),          # d (tiny)
            pl.BlockSpec((block_b, In_pad), lambda n, b: (b, 0)),    # x tile
            pl.BlockSpec((In_pad, tile_n), lambda n, b: (0, n)),     # P^T tile
            pl.BlockSpec((1, tile_n), lambda n, b: (0, n)),          # bias tile
        ],
        out_specs=pl.BlockSpec((block_b, tile_n), lambda n, b: (b, n)),
        compiler_params=pltpu.CompilerParams(
            dimension_semantics=("parallel", "parallel"),
            vmem_limit_bytes=_vmem_limit(mm_bytes(block_b, tile_n)),
        ),
    )(d, x_p, Pt, b_p)

    return y_pad[:B, :Out]


# ---------------------------------------------------------------------------
# pure-JAX reference
# ---------------------------------------------------------------------------
def aol_linear_ref(x, P, bias):
    ptp = jnp.abs(P.T @ P)
    d = 1.0 / jnp.sqrt(ptp.sum(axis=0) + 1e-10)
    W = P * d[None, :]
    return x @ W.T + bias


if __name__ == "__main__":
    key = jax.random.PRNGKey(0)
    k_x, k_p = jax.random.split(key)

    batch, in_features, out_features = 8, 32, 16
    x = jax.random.normal(k_x, (batch, in_features), dtype=jnp.float32)
    # Module uses randn for P, zeros for bias.
    P = jax.random.normal(k_p, (out_features, in_features), dtype=jnp.float32)
    bias = jnp.zeros((out_features,), dtype=jnp.float32)

    y_ref = aol_linear_ref(x, P, bias)

    # f32 MXU path.
    y = aol_linear(x, P, bias, use_bf16_mxu=False)
    jax.block_until_ready(y)
    assert y.shape == (batch, out_features)
    assert jnp.allclose(y, y_ref, atol=1e-4, rtol=1e-4), "f32 path mismatch"

    # bf16 MXU path (halved weight DMA/residency; f32 accumulation) --
    # exercised with a loose tolerance so the branch is actually validated.
    y_bf16 = aol_linear(x, P, bias, use_bf16_mxu=True)
    jax.block_until_ready(y_bf16)
    assert jnp.allclose(y_bf16, y_ref, atol=1e-1, rtol=1e-1), "bf16 path mismatch"

    print("KERNEL_OK")
</pallas_src>

<mosaic_0001>
module attributes {stable_mosaic.version = 11 : i64} {
  func.func @aol_d_resident_kernel(%arg0: i32, %arg1: memref<128x128xf32, #tpu.memory_space<vmem>>, %arg2: memref<1x128xf32, #tpu.memory_space<vmem>>) attributes {dimension_semantics = [#tpu.dimension_semantics<arbitrary>], iteration_bounds = array<i64: 1>, scalar_prefetch = 0 : i64, scratch_operands = 0 : i64, tpu.core_type = #tpu.core_type<tc>, window_params = [{pipeline_mode = #tpu.pipeline_mode<synchronous>, transform_indices = @transform_0, window_bounds = array<i64: 128, 128>}, {pipeline_mode = #tpu.pipeline_mode<synchronous>, transform_indices = @transform_1, window_bounds = array<i64: 1, 128>}]} {
    %c0_i32 = arith.constant 0 : i32
    %0 = arith.cmpi eq, %arg0, %c0_i32 : i32
    %1 = arith.extui %0 : i1 to i32
    %c0_i32_0 = arith.constant 0 : i32
    %2 = arith.cmpi ne, %1, %c0_i32_0 : i32
    scf.if %2 {
      %cst_10 = arith.constant 0.000000e+00 : f32
      %18 = vector.broadcast %cst_10 : f32 to vector<1x128xf32>
      %c0_11 = arith.constant 0 : index
      %c0_12 = arith.constant 0 : index
      %19 = vector.load %arg2[%c0_11, %c0_12] : memref<1x128xf32, #tpu.memory_space<vmem>>, vector<1x128xf32>
      tpu.vector_store %arg2[%c0_11, %c0_12], %18 {strides = array<i32>} : memref<1x128xf32, #tpu.memory_space<vmem>>, vector<1x128xf32>,
    } else {
    }
    %c128_i32 = arith.constant 128 : i32
    %3 = arith.muli %arg0, %c128_i32 : i32
    %4 = tpu.assume_multiple %3, 128 : i32
    %c0 = arith.constant 0 : index
    %5 = arith.index_cast %4 : i32 to index
    %6 = vector.load %arg1[%c0, %5] : memref<128x128xf32, #tpu.memory_space<vmem>>, vector<128x128xf32>
    %c0_1 = arith.constant 0 : index
    %c0_2 = arith.constant 0 : index
    %7 = vector.load %arg1[%c0_1, %c0_2] : memref<128x128xf32, #tpu.memory_space<vmem>>, vector<128x128xf32>
    %cst = arith.constant dense<0.000000e+00> : vector<128x128xf32>
    %8 = tpu.matmul %6, %7, %cst {dimension_numbers = #tpu.dot_dimension_numbers<[0], [0], [1], [1], [0, 1, 1, 1], [], []>} : vector<128x128xf32>, vector<128x128xf32>, vector<128x128xf32> -> vector<128x128xf32>
    %9 = math.absf %8 : vector<128x128xf32>
    %c0_3 = arith.constant 0 : index
    %c0_4 = arith.constant 0 : index
    %10 = vector.load %arg2[%c0_3, %c0_4] : memref<1x128xf32, #tpu.memory_space<vmem>>, vector<1x128xf32>
    %cst_5 = arith.constant dense<0.000000e+00> : vector<128xf32>
    %11 = vector.multi_reduction <add>, %9, %cst_5 [0] : vector<128x128xf32> to vector<128xf32>
    %12 = vector.shape_cast %11 : vector<128xf32> to vector<1x128xf32>
    %13 = arith.addf %10, %12 : vector<1x128xf32>
    %c0_6 = arith.constant 0 : index
    %c0_7 = arith.constant 0 : index
    %14 = vector.load %arg2[%c0_6, %c0_7] : memref<1x128xf32, #tpu.memory_space<vmem>>, vector<1x128xf32>
    tpu.vector_store %arg2[%c0_6, %c0_7], %13 {strides = array<i32>} : memref<1x128xf32, #tpu.memory_space<vmem>>, vector<1x128xf32>,
    %c0_i32_8 = arith.constant 0 : i32
    %15 = arith.cmpi eq, %arg0, %c0_i32_8 : i32
    %16 = arith.extui %15 : i1 to i32
    %c0_i32_9 = arith.constant 0 : i32
    %17 = arith.cmpi ne, %16, %c0_i32_9 : i32
    scf.if %17 {
      %c0_10 = arith.constant 0 : index
      %c0_11 = arith.constant 0 : index
      %18 = vector.load %arg2[%c0_10, %c0_11] : memref<1x128xf32, #tpu.memory_space<vmem>>, vector<1x128xf32>
      %cst_12 = arith.constant 1.000000e-10 : f32
      %19 = vector.broadcast %cst_12 : f32 to vector<1x128xf32>
      %20 = arith.addf %18, %19 : vector<1x128xf32>
      %21 = math.rsqrt %20 : vector<1x128xf32>
      %c0_13 = arith.constant 0 : index
      %c0_14 = arith.constant 0 : index
      %22 = vector.load %arg2[%c0_13, %c0_14] : memref<1x128xf32, #tpu.memory_space<vmem>>, vector<1x128xf32>
      tpu.vector_store %arg2[%c0_13, %c0_14], %21 {strides = array<i32>} : memref<1x128xf32, #tpu.memory_space<vmem>>, vector<1x128xf32>,
    } else {
    }
    return
  }
  func.func @transform_0(%arg0: i32) -> (i32, i32) {
    %c0_i32 = arith.constant 0 : i32
    %c0_i32_0 = arith.constant 0 : i32
    %c0_i32_1 = arith.constant 0 : i32
    return %c0_i32, %c0_i32_0 : i32, i32
  }
  func.func @transform_1(%arg0: i32) -> (i32, i32) {
    %c0_i32 = arith.constant 0 : i32
    %c0_i32_0 = arith.constant 0 : i32
    %c0_i32_1 = arith.constant 0 : i32
    return %c0_i32, %c0_i32_0 : i32, i32
  }
}

</mosaic_0001>

<bundles_post_ra>
// kernel: tpu_custom_call.1
= control target key start
LH: loop header
LB: loop body
LE: loop exit
PB: predicated region body
PF: predicated region fallthrough
CT: control target
= control target key end

     0   :  { %6 = vsyncpa [#allocation3], 0  ;;  %s428_s0 = inlined_call_operand.hbm [shape: f32[128,128], index: 0, kind: input, shape index: {}]   ;;  %s429_s1 = inlined_call_operand.hbm [shape: f32[1,128], index: 1, kind: output, shape index: {}]  }
   0x1   :  { %7 = vsyncpa [#allocation4], 0  ;;  %s12_s8 = sshll.u32 %s428_s0, 4  ;;  %s344_s9 = smov [#allocation2]   ;;  %s13_s8 = int_to_ptr.hbm [resolvable:$true] %s12_s8 }
   0x2   :  { %s14_s10 = sshll.u32 %s344_s9, 4  ;;  %s345_s11 = smov 128   ;;  %s15_s10 = int_to_ptr.vmem [resolvable:$true] %s14_s10 }
   0x3   :  { %s346_s12 = smov 8  }
   0x4   :  { %20 = dma.hbm_to_vmem [thread:$0]  %s13_s8, 2048, %s15_s10, [#allocation3], %s345_s11, %s345_s11, %s346_s12  }
   0x5   :  { %340 = dma.done.wait [#allocation3], 2048  }
   0x6   :  { %341 = vsyncadd [#allocation3], 4294965248  ;;  %v362_v0 = vld [vmem:[#allocation2] sm:$0xff]  ;;  %v365_v1 = vld [vmem:[#allocation2 + $0x8] sm:$0xff]  ;;  %v347_v38 = vmov 0.0   ;;  %s348_s0 = smov [#allocation5]  }
   0x7   :  { %66 = vxpose.xlu0.b32.start [1/16] %v362_v0, 128  ;;  %v368_v2 = vld [vmem:[#allocation2 + $0x10] sm:$0xff]  ;;  %v371_v3 = vld [vmem:[#allocation2 + $0x18] sm:$0xff]  ;;  %v374_v4 = vld [vmem:[#allocation2 + $0x20] sm:$0xff]  ;;  %29 = vst [vmem:[#allocation5] sm:$0x1] %v347_v38  ;;  %s224_s13 = sshll.u32 %s348_s0, 4  ;;  %s225_s13 = int_to_ptr.vmem [resolvable:$true] %s224_s13 }
   0x8   :  { %v377_v5 = vld [vmem:[#allocation2 + $0x28] sm:$0xff]  ;;  %v380_v6 = vld [vmem:[#allocation2 + $0x30] sm:$0xff]  ;;  %v41_v7 = vld [vmem:[#allocation2 + $0x38] sm:$0xff]  ;;  %s226_s16 = sshll.u32 %s429_s1, 4  ;;  %s227_s16 = int_to_ptr.hbm [resolvable:$true] %s226_s16 }
   0x9   :  { %v42_v8 = vld [vmem:[#allocation2 + $0x40] sm:$0xff]  ;;  %v43_v9 = vld [vmem:[#allocation2 + $0x48] sm:$0xff]  ;;  %v44_v10 = vld [vmem:[#allocation2 + $0x50] sm:$0xff] }
   0xa   :  { %v383_v11 = vld [vmem:[#allocation2 + $0x78] sm:$0xff]  ;;  %v387_v12 = vld [vmem:[#allocation2 + $0x70] sm:$0xff]  ;;  %v47_v13 = vld [vmem:[#allocation2 + $0x68] sm:$0xff] }
   0xb   :  { %98 = vmatpush.msra.mxu0 %v383_v11  ;;  %237 = vmatpush.msra.mxu1 %v383_v11  ;;  %v45_v14 = vld [vmem:[#allocation2 + $0x58] sm:$0xff]  ;;  %v46_v15 = vld [vmem:[#allocation2 + $0x60] sm:$0xff] }
   0xc   :  { %238 = vmatpush.msra.mxu2 %v383_v11  ;;  %239 = vmatpush.msra.mxu3 %v383_v11 }
   0xd   :  { %99 = vmatpush.msra.mxu0 %v387_v12  ;;  %240 = vmatpush.msra.mxu1 %v387_v12 }
   0xe   :  { %241 = vmatpush.msra.mxu2 %v387_v12  ;;  %242 = vmatpush.msra.mxu3 %v387_v12 }
   0xf   :  { %67 = vxpose.xlu0.b32.cont [2/16] %v365_v1, 128  ;;  %100 = vmatpush.msra.mxu0 %v47_v13 }
  0x10   :  { %243 = vmatpush.msra.mxu1 %v47_v13  ;;  %244 = vmatpush.msra.mxu2 %v47_v13 }
  0x11   :  { %245 = vmatpush.msra.mxu3 %v47_v13  ;;  %101 = vmatpush.msra.mxu0 %v46_v15 }
  0x12   :  { %246 = vmatpush.msra.mxu1 %v46_v15  ;;  %247 = vmatpush.msra.mxu2 %v46_v15 }
  0x13   :  { %102 = vmatpush.msra.mxu0 %v45_v14  ;;  %248 = vmatpush.msra.mxu3 %v46_v15 }
  0x14   :  { %249 = vmatpush.msra.mxu1 %v45_v14  ;;  %250 = vmatpush.msra.mxu2 %v45_v14 }
  0x15   :  { %103 = vmatpush.msra.mxu0 %v44_v10  ;;  %251 = vmatpush.msra.mxu3 %v45_v14 }
  0x16   :  { %252 = vmatpush.msra.mxu1 %v44_v10  ;;  %253 = vmatpush.msra.mxu2 %v44_v10 }
  0x17   :  { %68 = vxpose.xlu0.b32.cont [3/16] %v368_v2, 128  ;;  %104 = vmatpush.msra.mxu0 %v43_v9 }
  0x18   :  { %255 = vmatpush.msra.mxu1 %v43_v9  ;;  %256 = vmatpush.msra.mxu2 %v43_v9 }
  0x19   :  { %254 = vmatpush.msra.mxu3 %v44_v10  ;;  %105 = vmatpush.msra.mxu0 %v42_v8 }
  0x1a   :  { %258 = vmatpush.msra.mxu1 %v42_v8  ;;  %259 = vmatpush.msra.mxu2 %v42_v8 }
  0x1b   :  { %106 = vmatpush.msra.mxu0 %v41_v7  ;;  %257 = vmatpush.msra.mxu3 %v43_v9 }
  0x1c   :  { %261 = vmatpush.msra.mxu1 %v41_v7  ;;  %262 = vmatpush.msra.mxu2 %v41_v7 }
  0x1d   :  { %107 = vmatpush.msra.mxu0 %v380_v6  ;;  %260 = vmatpush.msra.mxu3 %v42_v8 }
  0x1e   :  { %264 = vmatpush.msra.mxu1 %v380_v6  ;;  %265 = vmatpush.msra.mxu2 %v380_v6 }
  0x1f   :  { %69 = vxpose.xlu0.b32.cont [4/16] %v371_v3, 128  ;;  %108 = vmatpush.msra.mxu0 %v377_v5 }
  0x20   :  { %267 = vmatpush.msra.mxu1 %v377_v5  ;;  %268 = vmatpush.msra.mxu2 %v377_v5 }
  0x21   :  { %263 = vmatpush.msra.mxu3 %v41_v7  ;;  %109 = vmatpush.msra.mxu0 %v374_v4 }
  0x22   :  { %270 = vmatpush.msra.mxu1 %v374_v4  ;;  %271 = vmatpush.msra.mxu2 %v374_v4 }
  0x23   :  { %110 = vmatpush.msra.mxu0 %v371_v3  ;;  %266 = vmatpush.msra.mxu3 %v380_v6 }
  0x24   :  { %273 = vmatpush.msra.mxu1 %v371_v3  ;;  %274 = vmatpush.msra.mxu2 %v371_v3 }
  0x25   :  { %111 = vmatpush.msra.mxu0 %v368_v2  ;;  %269 = vmatpush.msra.mxu3 %v377_v5 }
  0x26   :  { %276 = vmatpush.msra.mxu1 %v368_v2  ;;  %277 = vmatpush.msra.mxu2 %v368_v2 }
  0x27   :  { %70 = vxpose.xlu0.b32.cont [5/16] %v374_v4, 128  ;;  %112 = vmatpush.msra.mxu0 %v365_v1 }
  0x28   :  { %279 = vmatpush.msra.mxu1 %v365_v1  ;;  %280 = vmatpush.msra.mxu2 %v365_v1 }
  0x29   :  { %272 = vmatpush.msra.mxu3 %v374_v4  ;;  %113 = vmatpush.msra.mxu0 %v362_v0 }
  0x2a   :  { %282 = vmatpush.msra.mxu1 %v362_v0  ;;  %283 = vmatpush.msra.mxu2 %v362_v0 }
  0x2b   :  { %275 = vmatpush.msra.mxu3 %v371_v3 }
  0x2d   :  { %278 = vmatpush.msra.mxu3 %v368_v2 }
  0x2f   :  { %71 = vxpose.xlu0.b32.cont [6/16] %v377_v5, 128  ;;  %281 = vmatpush.msra.mxu3 %v365_v1 }
  0x31   :  { %284 = vmatpush.msra.mxu3 %v362_v0 }
  0x37   :  { %72 = vxpose.xlu0.b32.cont [7/16] %v380_v6, 128 }
  0x3f   :  { %73 = vxpose.xlu0.b32.cont [8/16] %v41_v7, 128 }
  0x47   :  { %74 = vxpose.xlu0.b32.cont [9/16] %v42_v8, 128 }
  0x4f   :  { %75 = vxpose.xlu0.b32.cont [10/16] %v43_v9, 128 }
  0x57   :  { %76 = vxpose.xlu0.b32.cont [11/16] %v44_v10, 128 }
  0x5f   :  { %77 = vxpose.xlu0.b32.cont [12/16] %v45_v14, 128 }
  0x67   :  { %78 = vxpose.xlu0.b32.cont [13/16] %v46_v15, 128 }
  0x6f   :  { %79 = vxpose.xlu0.b32.cont [14/16] %v47_v13, 128 }
  0x77   :  { %80 = vxpose.xlu0.b32.cont [15/16] %v387_v12, 128 }
  0x7f   :  { %81 = vxpose.xlu0.b32.end [16/16] %v383_v11, 128 }
  0xab   :  { %v82_v16 = vpop.trf.xlu0 }
  0xac   :  { %114 = vmatmul.f32.vlgmr.msra.gmra.mxu0 %v82_v16 }
  0xb3   :  { %v83_v17 = vpop.trf.xlu0 }
  0xb4   :  { %117 = vmatmul.f32.gmra.mxu0 %v83_v17 }
  0xbb   :  { %v84_v18 = vpop.trf.xlu0 }
  0xbc   :  { %120 = vmatmul.f32.gmra.mxu0 %v84_v18 }
  0xc3   :  { %v85_v19 = vpop.trf.xlu0 }
  0xc4   :  { %123 = vmatmul.f32.gmra.mxu0 %v85_v19 }
  0xcb   :  { %v86_v20 = vpop.trf.xlu0 }
  0xcc   :  { %126 = vmatmul.f32.vlgmr.msra.gmra.mxu1 %v86_v20 }
  0xd3   :  { %v87_v21 = vpop.trf.xlu0 }
  0xd4   :  { %129 = vmatmul.f32.gmra.mxu1 %v87_v21  ;;  %v179_v21 = vld [vmem:[#allocation5] sm:$0x1] }
  0xdb   :  { %v88_v22 = vpop.trf.xlu0 }
  0xdc   :  { %132 = vmatmul.f32.gmra.mxu1 %v88_v22 }
  0xe3   :  { %v89_v23 = vpop.trf.xlu0 }
  0xe4   :  { %135 = vmatmul.f32.gmra.mxu1 %v89_v23 }
  0xeb   :  { %v90_v24 = vpop.trf.xlu0 }
  0xec   :  { %138 = vmatmul.f32.vlgmr.msra.gmra.mxu2 %v90_v24 }
  0xf3   :  { %v91_v25 = vpop.trf.xlu0 }
  0xf4   :  { %141 = vmatmul.f32.gmra.mxu2 %v91_v25 }
  0xfb   :  { %v92_v26 = vpop.trf.xlu0 }
  0xfc   :  { %144 = vmatmul.f32.gmra.mxu2 %v92_v26 }
 0x103   :  { %v93_v27 = vpop.trf.xlu0 }
 0x104   :  { %147 = vmatmul.f32.gmra.mxu2 %v93_v27 }
 0x10b   :  { %v94_v28 = vpop.trf.xlu0 }
 0x10c   :  { %150 = vmatmul.f32.vlgmr.msra.gmra.mxu3 %v94_v28 }
 0x113   :  { %v95_v29 = vpop.trf.xlu0 }
 0x114   :  { %153 = vmatmul.f32.gmra.mxu3 %v95_v29 }
 0x11b   :  { %v96_v30 = vpop.trf.xlu0 }
 0x11c   :  { %156 = vmatmul.f32.gmra.mxu3 %v96_v30 }
 0x123   :  { %v97_v31 = vpop.trf.xlu0 }
 0x124   :  { %159 = vmatmul.f32.gmra.mxu3 %v97_v31 }
 0x129   :  { %v115_v32 = vpop.f32.mrf.mxu0 }
 0x12a   :  { %v163_v43 = vand.u32 2147483647, %v115_v32 }
 0x131   :  { %v118_v34 = vpop.f32.mrf.mxu0 }
 0x132   :  { %v164_v41 = vand.u32 2147483647, %v118_v34 }
 0x134   :  { %v180_v45 = vadd.f32 %v164_v41, %v163_v43 }
 0x139   :  { %v121_v37 = vpop.f32.mrf.mxu0 }
 0x13a   :  { %v165_v44 = vand.u32 2147483647, %v121_v37 }
 0x13c   :  { %v181_v48 = vadd.f32 %v180_v45, %v165_v44 }
 0x141   :  { %v124_v42 = vpop.f32.mrf.mxu0 }
 0x142   :  { %v166_v46 = vand.u32 2147483647, %v124_v42 }
 0x144   :  { %v182_v51 = vadd.f32 %v181_v48, %v166_v46 }
 0x149   :  { %v127_v33 = vpop.f32.mrf.mxu1 }
 0x14a   :  { %v167_v49 = vand.u32 2147483647, %v127_v33 }
 0x14c   :  { %v183_v54 = vadd.f32 %v182_v51, %v167_v49 }
 0x151   :  { %v130_v36 = vpop.f32.mrf.mxu1 }
 0x152   :  { %v168_v52 = vand.u32 2147483647, %v130_v36 }
 0x154   :  { %v184_v56 = vadd.f32 %v183_v54, %v168_v52 }
 0x159   :  { %v133_v40 = vpop.f32.mrf.mxu1 }
 0x15a   :  { %v169_v55 = vand.u32 2147483647, %v133_v40 }
 0x15c   :  { %v185_v59 = vadd.f32 %v184_v56, %v169_v55 }
 0x161   :  { %v136_v53 = vpop.f32.mrf.mxu1 }
 0x162   :  { %v170_v57 = vand.u32 2147483647, %v136_v53 }
 0x164   :  { %v186_v61 = vadd.f32 %v185_v59, %v170_v57 }
 0x16f   :  { %v139_v35 = vpop.f32.mrf.mxu2 }
 0x170   :  { %v171_v60 = vand.u32 2147483647, %v139_v35 }
 0x172   :  { %v187_v0 = vadd.f32 %v186_v61, %v171_v60 }
 0x177   :  { %v142_v39 = vpop.f32.mrf.mxu2 }
 0x178   :  { %v172_v62 = vand.u32 2147483647, %v142_v39 }
 0x17a   :  { %v188_v2 = vadd.f32 %v187_v0, %v172_v62 }
 0x17f   :  { %v145_v50 = vpop.f32.mrf.mxu2 }
 0x180   :  { %v173_v1 = vand.u32 2147483647, %v145_v50 }
 0x182   :  { %v189_v5 = vadd.f32 %v188_v2, %v173_v1 }
 0x187   :  { %v148_v63 = vpop.f32.mrf.mxu2 }
 0x188   :  { %v174_v3 = vand.u32 2147483647, %v148_v63 }
 0x18a   :  { %v190_v7 = vadd.f32 %v189_v5, %v174_v3 }
 0x18f   :  { %v151_v47 = vpop.f32.mrf.mxu3 }
 0x190   :  { %v175_v6 = vand.u32 2147483647, %v151_v47 }
 0x192   :  { %v191_v9 = vadd.f32 %v190_v7, %v175_v6 }
 0x197   :  { %v154_v58 = vpop.f32.mrf.mxu3 }
 0x198   :  { %v176_v8 = vand.u32 2147483647, %v154_v58 }
 0x19a   :  { %v192_v11 = vadd.f32 %v191_v9, %v176_v8 }
 0x19f   :  { %v157_v4 = vpop.f32.mrf.mxu3 }
 0x1a0   :  { %v177_v10 = vand.u32 2147483647, %v157_v4 }
 0x1a2   :  { %v193_v13 = vadd.f32 %v192_v11, %v177_v10 }
 0x1a7   :  { %v160_v12 = vpop.f32.mrf.mxu3 }
 0x1a8   :  { %v178_v14 = vand.u32 2147483647, %v160_v12 }
 0x1aa   :  { %v194_v15 = vadd.f32 %v193_v13, %v178_v14 }
 0x1ac   :  { %v195_v16 = vrot.slane %v194_v15, 4 }
 0x1ae   :  { %v196_v17 = vadd.f32 %v195_v16, %v194_v15 }
 0x1b0   :  { %v197_v18 = vrot.slane %v196_v17, 2 }
 0x1b2   :  { %v198_v19 = vadd.f32 %v197_v18, %v196_v17 }
 0x1b4   :  { %v199_v20 = vrot.slane %v198_v19, 1 }
 0x1b6   :  { %v200_v22 = vadd.f32 %v199_v20, %v198_v19 }
 0x1b8   :  { %v201_v23 = vadd.f32 %v200_v22, %v179_v21 }
 0x1ba   :  { %202 = vst [vmem:[#allocation5] sm:$0x1] %v201_v23 }
 0x1c1   :  { %v206_v24 = vld [vmem:[#allocation5] sm:$0x1] }
 0x1c2   :  { %v207_v25 = vadd.f32 1e-10, %v206_v24 }
 0x1c4   :  { %290 = vrsqrt.f32 %v207_v25  ;;  %vm214_vm1 = vweird.f32 %v207_v25 }
 0x1ca   :  { %v291_v26 = vpop.eup %290 }
 0x1cb   :  { %v209_v27 = vmul.f32 %v291_v26, %v207_v25  ;;  %vm215_vm0 = vweird.f32 %v291_v26 }
 0x1cc   :  { %vm216_vm2 = vmor %vm214_vm1, %vm215_vm0 }
 0x1cd   :  { %v210_v28 = vmul.f32 %v291_v26, %v209_v27 }
 0x1cf   :  { %v211_v29 = vmul.f32 0.5, %v210_v28 }
 0x1d1   :  { %v212_v30 = vsub.f32 1.5, %v211_v29 }
 0x1d3   :  { %v213_v31 = vmul.f32 %v291_v26, %v212_v30 }
 0x1d5   :  { %v217_v32 = vsel %vm216_vm2, %v291_v26, %v213_v31 }
 0x1d6   :  { %218 = vst [vmem:[#allocation5] sm:$0x1] %v217_v32 }
 0x1d7   :  { %229 = dma.vmem_to_hbm [thread:$0]  %s225_s13, 16, %s227_s16, [#allocation4]  }
 0x1d8   :  { %342 = dma.done.wait [#allocation4], 16  }
 0x1d9   :  { %343 = vsyncadd [#allocation4], 4294967280 }
 0x1da   :  { %234 = vsyncpa [#allocation3], 1 }
 0x1db   :  { %235 = vsyncpa [#allocation4], 1 }

</bundles_post_ra>
